<compile_context>
chip_gen: v7x
topology: tpu7x:2x2x1
jax: 0.10.0
libtpu: 0.0.40
codegen_flags: <defaults>
</compile_context>

<pallas_src>
import jax
import jax.numpy as jnp
import numpy as np
from jax import lax
from jax.experimental import pallas as pl
from jax.experimental.pallas import tpu as pltpu


def _round_up(n, m):
    return ((n + m - 1) // m) * m


def _choose_tile(n, max_tile):
    """Tile size along the atom/pair axis.

    Small n -> one full-extent block (block dim == array dim is always legal).
    Larger n -> a multiple of 128 capped at max_tile, sized so the grid has at
    least 2 steps (lets dimension_semantics=("parallel",) shard across v7x's
    two TensorCores).  Padding waste is bounded by one ragged last block.
    """
    if n < 256:
        return n
    t = _round_up(-(-n // 2), 128)          # ceil(n/2) rounded up to 128
    return min(t, max_tile)


# ----------------------------- in-kernel helpers -----------------------------

def _softplus_and_sigmoid(h):
    # PyTorch Softplus(beta=1, threshold=20) and its derivative (sigmoid).
    # exp() is evaluated once and reused for both (halves EUP load); the divide
    # is replaced by an EUP approximate reciprocal.  `1 - inv` returns exactly
    # 1.0 in the h > 20 linear branch, matching torch autograd.
    t = jnp.exp(jnp.minimum(h, 20.0))
    sp = jnp.where(h > 20.0, h, jnp.log1p(t))
    sig = 1.0 - pl.reciprocal(1.0 + t, approx=True)
    return sp, sig


# ------------------------- kernel 1: MLP energy + dE/dx -----------------------

def mlp_energy_grad_kernel(x_ref, w_ref, b_ref, w3_ref, b3_ref, e_ref, g_ref):
    x = x_ref[...]                       # (tm, nd)  row-major atom tile
    wf = w_ref[0]                        # folded Linear0+Linear1    (nd, nd)
    w2 = w_ref[1]                        # third Linear              (nd, nd)
    bf = b_ref[0]                        # (nd, 1)
    b2 = b_ref[1]                        # (nd, 1)
    w3 = w3_ref[...]                     # (nd, 1)   last-layer weight column

    # ---- forward, lane-dense (descriptors on sublanes, atoms on lanes) ----
    # The input transpose is folded into the first matmul:  Wf @ X^T  (A @ B^T)
    h1 = lax.dot_general(wf, x, (((1,), (1,)), ((), ())),
                         preferred_element_type=jnp.float32) + bf       # (nd, tm)
    a1, s1 = _softplus_and_sigmoid(h1)
    h2 = lax.dot_general(w2, a1, (((1,), (0,)), ((), ())),
                         preferred_element_type=jnp.float32) + b2       # (nd, tm)
    a2, s2 = _softplus_and_sigmoid(h2)
    # last Linear (nd -> 1) as a VPU multiply + sublane reduce (no M=1 matmul)
    e_ref[...] = jnp.sum(a2 * w3, axis=0, keepdims=True) + b3_ref[...]  # (1, tm)

    # ---- analytic backward for dE/dx (replaces torch.autograd.grad) ----
    g2 = w3 * s2                                                        # (nd, tm)
    g1 = lax.dot_general(w2, g2, (((0,), (0,)), ((), ())),
                         preferred_element_type=jnp.float32) * s1       # (nd, tm)
    # The final W^T matmul emits the row-major gradient directly (A^T @ B), so
    # no transpose op in the kernel and a contiguous row gather downstream.
    # TODO(synk): bf16 MXU operands (f32 accumulation) would triple MXU
    # throughput on v5e/v6e but need re-validation against the 1e-3 tolerance.
    g_ref[...] = lax.dot_general(g1, wf, (((0,), (0,)), ((), ())),
                                 preferred_element_type=jnp.float32)    # (tm, nd)


def mlp_energy_and_grad(x, kparams, max_tile=2048):
    """Per-atom energies (N,) and row-major dE/dx (N, nd) from one fused kernel."""
    N, nd = x.shape
    w_stack, b_stack, w3c, b3 = kparams
    tm = _choose_tile(N, max_tile)
    grid = (pl.cdiv(N, tm),)

    full3 = lambda i: (0, 0, 0)
    full2 = lambda i: (0, 0)

    e, g = pl.pallas_call(
        mlp_energy_grad_kernel,
        out_shape=(jax.ShapeDtypeStruct((1, N), jnp.float32),
                   jax.ShapeDtypeStruct((N, nd), jnp.float32)),
        grid_spec=pltpu.PrefetchScalarGridSpec(
            num_scalar_prefetch=0,
            grid=grid,
            in_specs=[pl.BlockSpec((tm, nd), lambda i: (i, 0)),   # row-major x
                      pl.BlockSpec((2, nd, nd), full3),           # stacked weights
                      pl.BlockSpec((2, nd, 1), full3),            # stacked biases
                      pl.BlockSpec((nd, 1), full2),               # last-layer w
                      pl.BlockSpec((1, 1), full2)],               # last-layer b
            out_specs=[pl.BlockSpec((1, tm), lambda i: (0, i)),   # energies
                       pl.BlockSpec((tm, nd), lambda i: (i, 0))]),  # dE/dx row-major
        compiler_params=pltpu.CompilerParams(
            dimension_semantics=("parallel",),
            vmem_limit_bytes=32 * 1024 * 1024),
    )(x.astype(jnp.float32), w_stack, b_stack, w3c, b3)
    return e[0], g


# --------------- kernel 2: per-pair elementwise mul + reduce over nd ----------

def force_pair_kernel(dddr_ref, dedd_ref, out_ref):
    # row-major (tp, nd) tiles: elementwise product, reduce over descriptors
    out_ref[...] = jnp.sum(dddr_ref[...] * dedd_ref[...], axis=1, keepdims=True)


def force_pair_sums(dDdRx, dEdD_g, max_tile=4096):
    P, nd = dDdRx.shape
    tp = _choose_tile(P, max_tile)
    grid = (pl.cdiv(P, tp),)
    # TODO(synk): the xd[0::3] slice and the neighbor row gather could be fused
    # in here via a stride-3 DMA / scalar-prefetched per-row gather from HBM.
    out = pl.pallas_call(
        force_pair_kernel,
        out_shape=jax.ShapeDtypeStruct((P, 1), jnp.float32),
        grid_spec=pltpu.PrefetchScalarGridSpec(
            num_scalar_prefetch=0,
            grid=grid,
            in_specs=[pl.BlockSpec((tp, nd), lambda i: (i, 0)),
                      pl.BlockSpec((tp, nd), lambda i: (i, 0))],
            out_specs=pl.BlockSpec((tp, 1), lambda i: (i, 0))),
        compiler_params=pltpu.CompilerParams(
            dimension_semantics=("parallel",),
            vmem_limit_bytes=32 * 1024 * 1024),
    )(dDdRx.astype(jnp.float32), dEdD_g.astype(jnp.float32))
    return out[:, 0]


# ------------------------------ FitTorch forward ------------------------------

def _prepare_params(params):
    w0, b0, w1, b1, w2, b2, w3, b3 = [jnp.asarray(p, jnp.float32) for p in params]
    nd = w0.shape[0]
    # Fold Linear0 into Linear1 (no nonlinearity between them):
    #   (x @ w0.T + b0) @ w1.T + b1  ==  x @ (w1 @ w0).T + (w1 @ b0.T + b1.T).T
    wf = w1 @ w0                                                 # (nd, nd)
    bf = w1 @ b0.reshape(nd, 1) + b1.reshape(nd, 1)              # (nd, 1)
    w_stack = jnp.stack([wf, w2])                                # (2, nd, nd)
    b_stack = jnp.stack([bf, b2.reshape(nd, 1)])                 # (2, nd, 1)
    return w_stack, b_stack, w3.reshape(nd, 1), b3.reshape(1, 1)


def fit_torch_forward(x, xd, indices, atoms_per_structure, force_indices,
                      params, natoms):
    kparams = _prepare_params(params)

    # fused MLP forward + analytic dE/dx, both row-major
    per_atom_energy, dEdD = mlp_energy_and_grad(x, kparams)

    # predicted_energy_total.index_add_(0, indices, ...)
    # TODO(synk): dynamic-index scatter-add kept in plain JAX (no clean Pallas scatter)
    predicted_energy_total = jnp.zeros(
        atoms_per_structure.shape[0], dtype=jnp.float32
    ).at[indices].add(per_atom_energy)

    # force-index bookkeeping (glue, mirrors the torch code exactly)
    atom_indices = force_indices[0::3, 1].astype(jnp.int32) - 1
    neigh_indices = force_indices[0::3, 0].astype(jnp.int32) - 1

    # contiguous row gather (dEdD is row-major now) + stride-3 row slice
    dEdD_g = dEdD[neigh_indices, :]                 # (P, nd)
    dDdRx = xd[0::3]                                # (P, nd)

    # elementwise = dDdRx * dEdD[neigh]; contract over nd in the Pallas kernel.
    # (index_add into (natoms, nd) followed by sum over dim=1 == scatter-add of
    #  the per-pair row sums, since sum is linear.)
    pair_sums = force_pair_sums(dDdRx, dEdD_g)
    predicted_forces = jnp.zeros(natoms, dtype=jnp.float32).at[atom_indices].add(pair_sums)

    return predicted_energy_total, predicted_forces


# --------------------------- pure-JAX reference check -------------------------

def _reference(x, xd, indices, atoms_per_structure, force_indices, params, natoms):
    w0, b0, w1, b1, w2, b2, w3, b3 = params

    def net(xx):
        h0 = xx @ w0.T + b0[0]
        h1 = h0 @ w1.T + b1[0]
        a1 = jax.nn.softplus(h1)
        h2 = a1 @ w2.T + b2[0]
        a2 = jax.nn.softplus(h2)
        return a2 @ w3.T + b3[0]

    e = net(x)[:, 0]
    etot = jnp.zeros(atoms_per_structure.shape[0]).at[indices].add(e)
    dEdD = jax.grad(lambda xx: jnp.sum(net(xx)))(x)
    atom_idx = force_indices[0::3, 1].astype(jnp.int32) - 1
    neigh_idx = force_indices[0::3, 0].astype(jnp.int32) - 1
    elementwise = xd[0::3] * dEdD[neigh_idx, :]
    contracted = jnp.zeros((natoms, x.shape[1])).at[atom_idx].add(elementwise)
    forces = jnp.sum(contracted, axis=1)
    return etot, forces


# ------------------------------------ main ------------------------------------

if __name__ == "__main__":
    nd = 32          # descriptor length
    natoms = 8       # atoms per configuration
    nbatch = 2       # configurations
    N = nbatch * natoms
    npairs = 24      # neighbor pairs

    key = jax.random.PRNGKey(0)
    ks = jax.random.split(key, 16)

    def linear_init(kw, kb, fan_in, fan_out):
        bound = 1.0 / np.sqrt(fan_in)
        w = jax.random.uniform(kw, (fan_out, fan_in), jnp.float32, -bound, bound)
        b = jax.random.uniform(kb, (1, fan_out), jnp.float32, -bound, bound)
        return w, b

    # layer_sizes = [nd, nd, nd, 1]  ->  Linear(nd,nd), Linear(nd,nd)+Softplus,
    #                                    Linear(nd,nd)+Softplus, Linear(nd,1)
    w0, b0 = linear_init(ks[0], ks[1], nd, nd)
    w1, b1 = linear_init(ks[2], ks[3], nd, nd)
    w2, b2 = linear_init(ks[4], ks[5], nd, nd)
    w3, b3 = linear_init(ks[6], ks[7], nd, 1)
    b3 = b3.reshape(1, 1)
    params = (w0, b0, w1, b1, w2, b2, w3, b3)

    x = jax.random.normal(ks[8], (N, nd), jnp.float32)
    xd = jax.random.normal(ks[9], (3 * npairs, nd), jnp.float32)
    indices = jnp.repeat(jnp.arange(nbatch, dtype=jnp.int32), natoms)
    atoms_per_structure = jnp.full((nbatch,), natoms, dtype=jnp.int32)

    # force_indices: (3*npairs, 2) 1-based (neighbor, atom) indices, every 3rd
    # row is the x-component row used by the model.
    neigh_1b = jax.random.randint(ks[10], (npairs, 1), 1, N + 1, jnp.int32)
    atom_1b = jax.random.randint(ks[11], (npairs, 1), 1, natoms + 1, jnp.int32)
    force_indices = jnp.repeat(jnp.concatenate([neigh_1b, atom_1b], axis=1),
                               3, axis=0)

    etot, forces = fit_torch_forward(x, xd, indices, atoms_per_structure,
                                     force_indices, params, natoms)
    jax.block_until_ready((etot, forces))

    etot_ref, forces_ref = _reference(x, xd, indices, atoms_per_structure,
                                      force_indices, params, natoms)
    np.testing.assert_allclose(np.asarray(etot), np.asarray(etot_ref),
                               rtol=1e-3, atol=1e-3)
    np.testing.assert_allclose(np.asarray(forces), np.asarray(forces_ref),
                               rtol=1e-3, atol=1e-3)

    print("KERNEL_OK")
</pallas_src>

<mosaic_0001>
module attributes {stable_mosaic.version = 11 : i64} {
  func.func @mlp_energy_grad_kernel(%arg0: i32, %arg1: memref<16x32xf32, #tpu.memory_space<vmem>>, %arg2: memref<2x32x32xf32, #tpu.memory_space<vmem>>, %arg3: memref<2x32x1xf32, #tpu.memory_space<vmem>>, %arg4: memref<32x1xf32, #tpu.memory_space<vmem>>, %arg5: memref<1x1xf32, #tpu.memory_space<vmem>>, %arg6: memref<1x16xf32, #tpu.memory_space<vmem>>, %arg7: memref<16x32xf32, #tpu.memory_space<vmem>>) attributes {dimension_semantics = [#tpu.dimension_semantics<parallel>], iteration_bounds = array<i64: 1>, scalar_prefetch = 0 : i64, scratch_operands = 0 : i64, tpu.core_type = #tpu.core_type<tc>, window_params = [{transform_indices = @transform_0, window_bounds = array<i64: 16, 32>}, {pipeline_mode = #tpu.pipeline_mode<synchronous>, transform_indices = @transform_1, window_bounds = array<i64: 2, 32, 32>}, {pipeline_mode = #tpu.pipeline_mode<synchronous>, transform_indices = @transform_2, window_bounds = array<i64: 2, 32, 1>}, {pipeline_mode = #tpu.pipeline_mode<synchronous>, transform_indices = @transform_3, window_bounds = array<i64: 32, 1>}, {pipeline_mode = #tpu.pipeline_mode<synchronous>, transform_indices = @transform_4, window_bounds = array<i64: 1, 1>}, {transform_indices = @transform_5, window_bounds = array<i64: 1, 16>}, {transform_indices = @transform_6, window_bounds = array<i64: 16, 32>}]} {
    %c0 = arith.constant 0 : index
    %c0_0 = arith.constant 0 : index
    %0 = vector.load %arg1[%c0, %c0_0] : memref<16x32xf32, #tpu.memory_space<vmem>>, vector<16x32xf32>
    %c0_1 = arith.constant 0 : index
    %c0_2 = arith.constant 0 : index
    %c0_3 = arith.constant 0 : index
    %1 = vector.load %arg2[%c0_1, %c0_2, %c0_3] : memref<2x32x32xf32, #tpu.memory_space<vmem>>, vector<1x32x32xf32>
    %2 = vector.shape_cast %1 : vector<1x32x32xf32> to vector<32x32xf32>
    %c1 = arith.constant 1 : index
    %c0_4 = arith.constant 0 : index
    %c0_5 = arith.constant 0 : index
    %3 = vector.load %arg2[%c1, %c0_4, %c0_5] : memref<2x32x32xf32, #tpu.memory_space<vmem>>, vector<1x32x32xf32>
    %4 = vector.shape_cast %3 : vector<1x32x32xf32> to vector<32x32xf32>
    %c0_6 = arith.constant 0 : index
    %c0_7 = arith.constant 0 : index
    %c0_8 = arith.constant 0 : index
    %5 = vector.load %arg3[%c0_6, %c0_7, %c0_8] : memref<2x32x1xf32, #tpu.memory_space<vmem>>, vector<1x32x1xf32>
    %6 = vector.shape_cast %5 : vector<1x32x1xf32> to vector<32x1xf32>
    %c1_9 = arith.constant 1 : index
    %c0_10 = arith.constant 0 : index
    %c0_11 = arith.constant 0 : index
    %7 = vector.load %arg3[%c1_9, %c0_10, %c0_11] : memref<2x32x1xf32, #tpu.memory_space<vmem>>, vector<1x32x1xf32>
    %8 = vector.shape_cast %7 : vector<1x32x1xf32> to vector<32x1xf32>
    %c0_12 = arith.constant 0 : index
    %c0_13 = arith.constant 0 : index
    %9 = vector.load %arg4[%c0_12, %c0_13] : memref<32x1xf32, #tpu.memory_space<vmem>>, vector<32x1xf32>
    %cst = arith.constant dense<0.000000e+00> : vector<32x16xf32>
    %10 = tpu.matmul %2, %0, %cst {dimension_numbers = #tpu.dot_dimension_numbers<[1], [1], [0], [0], [0, 0, 1, 0], [], []>} : vector<32x32xf32>, vector<16x32xf32>, vector<32x16xf32> -> vector<32x16xf32>
    %11 = vector.broadcast %6 : vector<32x1xf32> to vector<32x16xf32>
    %12 = arith.addf %10, %11 : vector<32x16xf32>
    %cst_14 = arith.constant 2.000000e+01 : f32
    %13 = vector.broadcast %cst_14 : f32 to vector<32x16xf32>
    %14 = arith.minimumf %12, %13 : vector<32x16xf32>
    %15 = math.exp %14 : vector<32x16xf32>
    %cst_15 = arith.constant 2.000000e+01 : f32
    %16 = vector.broadcast %cst_15 : f32 to vector<32x16xf32>
    %17 = arith.cmpf ogt, %12, %16 : vector<32x16xf32>
    %18 = math.log1p %15 : vector<32x16xf32>
    %19 = arith.select %17, %12, %18 : vector<32x16xi1>, vector<32x16xf32>
    %cst_16 = arith.constant 1.000000e+00 : f32
    %20 = vector.broadcast %cst_16 : f32 to vector<32x16xf32>
    %21 = arith.addf %20, %15 : vector<32x16xf32>
    %22 = tpu.reciprocal %21 {approx = true} : vector<32x16xf32> -> vector<32x16xf32>
    %cst_17 = arith.constant 1.000000e+00 : f32
    %23 = vector.broadcast %cst_17 : f32 to vector<32x16xf32>
    %24 = arith.subf %23, %22 : vector<32x16xf32>
    %cst_18 = arith.constant dense<0.000000e+00> : vector<32x16xf32>
    %25 = tpu.matmul %4, %19, %cst_18 {dimension_numbers = #tpu.dot_dimension_numbers<[1], [0], [0], [1], [0, 0, 1, 1], [], []>} : vector<32x32xf32>, vector<32x16xf32>, vector<32x16xf32> -> vector<32x16xf32>
    %26 = vector.broadcast %8 : vector<32x1xf32> to vector<32x16xf32>
    %27 = arith.addf %25, %26 : vector<32x16xf32>
    %cst_19 = arith.constant 2.000000e+01 : f32
    %28 = vector.broadcast %cst_19 : f32 to vector<32x16xf32>
    %29 = arith.minimumf %27, %28 : vector<32x16xf32>
    %30 = math.exp %29 : vector<32x16xf32>
    %cst_20 = arith.constant 2.000000e+01 : f32
    %31 = vector.broadcast %cst_20 : f32 to vector<32x16xf32>
    %32 = arith.cmpf ogt, %27, %31 : vector<32x16xf32>
    %33 = math.log1p %30 : vector<32x16xf32>
    %34 = arith.select %32, %27, %33 : vector<32x16xi1>, vector<32x16xf32>
    %cst_21 = arith.constant 1.000000e+00 : f32
    %35 = vector.broadcast %cst_21 : f32 to vector<32x16xf32>
    %36 = arith.addf %35, %30 : vector<32x16xf32>
    %37 = tpu.reciprocal %36 {approx = true} : vector<32x16xf32> -> vector<32x16xf32>
    %cst_22 = arith.constant 1.000000e+00 : f32
    %38 = vector.broadcast %cst_22 : f32 to vector<32x16xf32>
    %39 = arith.subf %38, %37 : vector<32x16xf32>
    %40 = vector.broadcast %9 : vector<32x1xf32> to vector<32x16xf32>
    %41 = arith.mulf %34, %40 : vector<32x16xf32>
    %cst_23 = arith.constant dense<0.000000e+00> : vector<16xf32>
    %42 = vector.multi_reduction <add>, %41, %cst_23 [0] : vector<32x16xf32> to vector<16xf32>
    %43 = vector.shape_cast %42 : vector<16xf32> to vector<1x16xf32>
    %c0_24 = arith.constant 0 : index
    %c0_25 = arith.constant 0 : index
    %44 = vector.load %arg5[%c0_24, %c0_25] : memref<1x1xf32, #tpu.memory_space<vmem>>, vector<1x1xf32>
    %45 = vector.broadcast %44 : vector<1x1xf32> to vector<1x16xf32>
    %46 = arith.addf %43, %45 : vector<1x16xf32>
    %c0_26 = arith.constant 0 : index
    %c0_27 = arith.constant 0 : index
    %47 = vector.load %arg6[%c0_26, %c0_27] : memref<1x16xf32, #tpu.memory_space<vmem>>, vector<1x16xf32>
    tpu.vector_store %arg6[%c0_26, %c0_27], %46 {strides = array<i32>} : memref<1x16xf32, #tpu.memory_space<vmem>>, vector<1x16xf32>,
    %48 = vector.broadcast %9 : vector<32x1xf32> to vector<32x16xf32>
    %49 = arith.mulf %48, %39 : vector<32x16xf32>
    %cst_28 = arith.constant dense<0.000000e+00> : vector<32x16xf32>
    %50 = tpu.matmul %4, %49, %cst_28 {dimension_numbers = #tpu.dot_dimension_numbers<[0], [0], [1], [1], [0, 1, 1, 1], [], []>} : vector<32x32xf32>, vector<32x16xf32>, vector<32x16xf32> -> vector<32x16xf32>
    %51 = arith.mulf %50, %24 : vector<32x16xf32>
    %cst_29 = arith.constant dense<0.000000e+00> : vector<16x32xf32>
    %52 = tpu.matmul %51, %2, %cst_29 {dimension_numbers = #tpu.dot_dimension_numbers<[0], [0], [1], [1], [0, 1, 1, 1], [], []>} : vector<32x16xf32>, vector<32x32xf32>, vector<16x32xf32> -> vector<16x32xf32>
    %c0_30 = arith.constant 0 : index
    %c0_31 = arith.constant 0 : index
    %53 = vector.load %arg7[%c0_30, %c0_31] : memref<16x32xf32, #tpu.memory_space<vmem>>, vector<16x32xf32>
    tpu.vector_store %arg7[%c0_30, %c0_31], %52 {strides = array<i32>} : memref<16x32xf32, #tpu.memory_space<vmem>>, vector<16x32xf32>,
    return
  }
  func.func @transform_0(%arg0: i32) -> (i32, i32) {
    %c0_i32 = arith.constant 0 : i32
    %c0_i32_0 = arith.constant 0 : i32
    return %arg0, %c0_i32 : i32, i32
  }
  func.func @transform_1(%arg0: i32) -> (i32, i32, i32) {
    %c0_i32 = arith.constant 0 : i32
    %c0_i32_0 = arith.constant 0 : i32
    %c0_i32_1 = arith.constant 0 : i32
    %c0_i32_2 = arith.constant 0 : i32
    return %c0_i32, %c0_i32_0, %c0_i32_1 : i32, i32, i32
  }
  func.func @transform_2(%arg0: i32) -> (i32, i32, i32) {
    %c0_i32 = arith.constant 0 : i32
    %c0_i32_0 = arith.constant 0 : i32
    %c0_i32_1 = arith.constant 0 : i32
    %c0_i32_2 = arith.constant 0 : i32
    return %c0_i32, %c0_i32_0, %c0_i32_1 : i32, i32, i32
  }
  func.func @transform_3(%arg0: i32) -> (i32, i32) {
    %c0_i32 = arith.constant 0 : i32
    %c0_i32_0 = arith.constant 0 : i32
    %c0_i32_1 = arith.constant 0 : i32
    return %c0_i32, %c0_i32_0 : i32, i32
  }
  func.func @transform_4(%arg0: i32) -> (i32, i32) {
    %c0_i32 = arith.constant 0 : i32
    %c0_i32_0 = arith.constant 0 : i32
    %c0_i32_1 = arith.constant 0 : i32
    return %c0_i32, %c0_i32_0 : i32, i32
  }
  func.func @transform_5(%arg0: i32) -> (i32, i32) {
    %c0_i32 = arith.constant 0 : i32
    %c0_i32_0 = arith.constant 0 : i32
    return %c0_i32, %arg0 : i32, i32
  }
  func.func @transform_6(%arg0: i32) -> (i32, i32) {
    %c0_i32 = arith.constant 0 : i32
    %c0_i32_0 = arith.constant 0 : i32
    return %arg0, %c0_i32 : i32, i32
  }
}

</mosaic_0001>

<bundles_post_ra>
// kernel: tpu_custom_call.1
= control target key start
LH: loop header
LB: loop body
LE: loop exit
PB: predicated region body
PF: predicated region fallthrough
CT: control target
= control target key end

     0   :  { %s1240_s0 = inlined_call_operand.vmem [shape: f32[16,32], index: 0, kind: input, shape index: {}]   ;;  %s1241_s1 = inlined_call_operand.vmem [shape: f32[2,32,32], index: 1, kind: input, shape index: {}]   ;;  %s1242_s2 = inlined_call_operand.vmem [shape: f32[2,32,1], index: 2, kind: input, shape index: {}]   ;;  %s1243_s3 = inlined_call_operand.vmem [shape: f32[32,1], index: 3, kind: input, shape index: {}]   ;;  %s1244_s4 = inlined_call_operand.<no memory space> [shape: f32[1,1], index: 4, kind: input, shape index: {}]   ;;  %s1245_s5 = inlined_call_operand.hbm [shape: f32[1,16], index: 5, kind: output, shape index: {0}]   ;;  %s1246_s6 = inlined_call_operand.hbm [shape: f32[16,32], index: 6, kind: output, shape index: {1}]  }
   0x1   :  { %v12_v0 = vstv %s1244_s4 }
   0x2   :  { %13 = vst [vmem:[#allocation2] sm:$0x1] %v12_v0 }
   0x3   :  { %14 = vsyncpa [#allocation4], 0  ;;  %v37_v1 = vld [vmem:[%s1242_s2] sm:$0xff]  ;;  %v27_v3 = vld [vmem:[%s1240_s0 + $0x8] sm:$0xff]  ;;  %vm70_vm0 = vcmask 261120   ;;  %v995_v4 = vmov 0  }
   0x4   :  { %v26_v2 = vld [vmem:[%s1240_s0] sm:$0xff]  ;;  %897 = vset.pattern.permute.xlu0 %v995_v4  ;;  %vm862_vm1 = vmpackc.low %vm70_vm0, %vm70_vm0  ;;  %898 = vset.pattern.permute.xlu1 %v995_v4  ;;  %v29_v7 = vld [vmem:[%s1241_s1 + $0x8] sm:$0xff] }
   0x5   :  { %v861_v5 = vpack.c.bf16 %v27_v3, %v26_v2  ;;  %52 = vperm.xlu0 %897, %v37_v1   ;;  %v28_v6 = vld [vmem:[%s1241_s1] sm:$0xff]  ;;  %v38_v8 = vld [vmem:[%s1242_s2 + $0x8] sm:$0xff]  ;;  %v39_v11 = vld [vmem:[%s1242_s2 + $0x10] sm:$0xff] }
   0x6   :  { %816 = vmatprep.mubr.msk.f32.mxu0 %vm70_vm0, %v28_v6  ;;  %v1059_v9 = vpack.c.bf16 %v29_v7, %v28_v6  ;;  %v760_v10 = vld [vmem:[%s1241_s1 + $0x20] sm:$0xff]  ;;  %62 = vperm.xlu1 %898, %v39_v11   ;;  %v40_v13 = vld [vmem:[%s1242_s2 + $0x18] sm:$0xff] }
   0x7   :  { %863 = vmatprep.subr.msk.bf16.mxu0 %vm862_vm1, %v861_v5  ;;  %830 = vmatprep.mubr.msk.f32.mxu1 %vm70_vm0, %v760_v10  ;;  %v764_v12 = vld [vmem:[%s1242_s2 + $0x20] sm:$0xff] }
   0x8   :  { %866 = vmatpush3.bf16.xpose.msk.msra.mxu0 %vm862_vm1, %v861_v5 }
   0x9   :  { %57 = vperm.xlu0 %897, %v38_v8  }
   0xa   :  { %15 = vsyncpa [#allocation6], 0  ;;  %v1077_v14 = vld [vmem:[%s1241_s1 + $0x10] sm:$0xff]  ;;  %67 = vperm.xlu1 %898, %v40_v13   ;;  %v765_v16 = vld [vmem:[%s1242_s2 + $0x28] sm:$0xff]  ;;  %vm451_vm11 = vcmask 130048  }
   0xb   :  { %v766_v15 = vld [vmem:[%s1242_s2 + $0x30] sm:$0xff]  ;;  %v1091_v17 = vld [vmem:[%s1241_s1 + $0x18] sm:$0xff]  ;;  %v46_v18 = vld [vmem:[%s1243_s3] sm:$0xff] }
   0xc   :  { %v767_v19 = vld [vmem:[%s1242_s2 + $0x38] sm:$0xff]  ;;  %v48_v20 = vld [vmem:[%s1243_s3 + $0x10] sm:$0xff]  ;;  %v47_v21 = vld [vmem:[%s1243_s3 + $0x8] sm:$0xff] }
   0xd   :  { %244 = vperm.xlu0 %897, %v764_v12   ;;  %v49_v22 = vld [vmem:[%s1243_s3 + $0x18] sm:$0xff]  ;;  %v1113_v23 = vld [vmem:[%s1241_s1 + $0x28] sm:$0xff]  ;;  %v1119_v24 = vld [vmem:[%s1241_s1 + $0x30] sm:$0xff] }
   0xe   :  { %249 = vperm.xlu1 %898, %v765_v16   ;;  %v1125_v25 = vld [vmem:[%s1241_s1 + $0x38] sm:$0xff]  ;;  %v465_v26 = vld [vmem:[#allocation2] sm:$0x1]  ;;  %s996_s1 = smov [#allocation3]  }
   0xf   :  { %817 = vmatmul.mubr.msk.f32.vlgmr.msra.gmra.mrb[0].mxu0 %vm70_vm0, %v29_v7  ;;  %s736_s3 = sshll.u32 %s996_s1, 4  ;;  %s737_s3 = int_to_ptr.vmem [resolvable:$true] %s736_s3 }
  0x10   :  { %819 = vmatprep.mubr.msk.f32.mxu0 %vm70_vm0, %v1077_v14  ;;  %s947_s14 = scalar_lea.vmem %s737_s3, 16  ;;  %s951_s15 = scalar_lea.vmem %s737_s3, 32 }
  0x11   :  { %254 = vperm.xlu0 %897, %v766_v15   ;;  %p948_p0 = scmp.ne.s32.totalorder %s737_s3, %s947_s14  ;;  %p952_p1 = scmp.lt.s32.totalorder %s737_s3, %s737_s3 }
  0x12   :  { %259 = vperm.xlu1 %898, %v767_v19   ;;  %p953_p2 = scmp.lt.s32.totalorder %s951_s15, %s947_s14 }
  0x13   :  { %820 = vmatmul.mubr.msk.f32.gmra.mrb[2].mxu0 %vm70_vm0, %v1091_v17 }
  0x14   :  { %p954_p3 = por %p953_p2, %p952_p1 }
  0x15   :  { %429 = vperm.xlu0 %897, %v46_v18  }
  0x16   :  { %434 = vperm.xlu1 %898, %v47_v21   ;;  %p955_p4 = pnand %p954_p3, %p948_p0 }
  0x19   :  { %439 = vperm.xlu0 %897, %v48_v20  }
  0x1a   :  { %444 = vperm.xlu1 %898, %v49_v22  }
  0x37   :  { %482 = vxpose.xlu0.b32.start [1/4] (short) (narrow) %v760_v10, 32 }
  0x3b   :  { %483 = vxpose.xlu0.b32.cont [2/4] (short) (narrow) %v1113_v23, 32 }
  0x3f   :  { %484 = vxpose.xlu0.b32.cont [3/4] (short) (narrow) %v1119_v24, 32 }
  0x43   :  { %485 = vxpose.xlu0.b32.end [4/4] (short) (narrow) %v1125_v25, 32 }
  0x6c   :  { %468 = vperm.xlu0 %897, %v465_v26  }
  0x84   :  { %v53_v27 = vpop.permute.xlu0 %52 }
  0x85   :  { %v63_v34 = vpop.permute.xlu1 %62 }
  0x88   :  { %v58_v28 = vpop.permute.xlu0 %57 }
  0x89   :  { %v68_v40 = vpop.permute.xlu1 %67 }
  0x8c   :  { %v1128_v29 = vpop.permute.xlu0 %244 }
  0x90   :  { %v1130_v30 = vpop.permute.xlu0 %254 }
  0x94   :  { %v1132_v31 = vpop.permute.xlu0 %429 }
  0x98   :  { %v1134_v32 = vpop.permute.xlu0 %439 }
  0xb7   :  { %v498_v33 = vpop.trf.xlu0 }
  0xb8   :  { %844 = vmatprep.mubr.msk.f32.mxu0 %vm70_vm0, %v498_v33 }
  0xe2   :  { %v818_v35 = vpop.f32.mrb[0].mxu0 }
  0xe3   :  { %v161_v36 = vadd.f32 %v818_v35, %v58_v28  ;;  %v155_v37 = vpop.f32.mrb[1].mxu0 }
  0xe4   :  { %v156_v38 = vadd.f32 %v155_v37, %v53_v27 }
  0xe5   :  { %v175_v39 = vmin.f32 %v161_v36, 20.0  ;;  %vm187_vm3 = vcmp.gt.f32.partialorder %v161_v36, 20.0 }
  0xe6   :  { %v174_v41 = vmin.f32 %v156_v38, 20.0  ;;  %v821_v42 = vpop.f32.mrb[2].mxu0  ;;  %vm186_vm5 = vcmp.gt.f32.partialorder %v156_v38, 20.0 }
  0xe7   :  { %v180_v43 = vmul.f32 1.442695, %v175_v39  ;;  %v1137_v44 = vadd.f32 %v821_v42, %v68_v40  ;;  %v165_v45 = vpop.f32.mrb[3].mxu0  ;;  %v250_v40 = vpop.permute.xlu1 %249 }
  0xe8   :  { %v178_v46 = vmul.f32 1.442695, %v174_v41  ;;  %v1139_v47 = vadd.f32 %v165_v45, %v63_v34 }
  0xe9   :  { %899 = vpow2.f32 %v180_v43  ;;  %v177_v48 = vmin.f32 %v1137_v44, 20.0  ;;  %vm189_vm7 = vcmp.gt.f32.partialorder %v1137_v44, 20.0 }
  0xea   :  { %901 = vpow2.f32 %v178_v46  ;;  %v176_v49 = vmin.f32 %v1139_v47, 20.0  ;;  %vm188_vm9 = vcmp.gt.f32.partialorder %v1139_v47, 20.0 }
  0xeb   :  { %v184_v50 = vmul.f32 1.442695, %v177_v48  ;;  %v260_v46 = vpop.permute.xlu1 %259 }
  0xec   :  { %v182_v51 = vmul.f32 1.442695, %v176_v49 }
  0xed   :  { %903 = vpow2.f32 %v184_v50 }
  0xee   :  { %905 = vpow2.f32 %v182_v51 }
  0xf3   :  { %v900_v52 = vpop.eup %899 }
  0xf4   :  { %v902_v53 = vpop.eup %901  ;;  %v1143_v54 = vadd.f32 1.0, %v900_v52  ;;  %v202_v59 = vmul.f32 -0.5, %v900_v52  ;;  %v205_v63 = vand.u32 2147483647, %v900_v52 }
  0xf5   :  { %v1145_v55 = vadd.f32 1.0, %v902_v53  ;;  %v193_v61 = vmul.f32 -0.5, %v902_v53  ;;  %v196_v3 = vand.u32 2147483647, %v902_v53 }
  0xf6   :  { %907 = vlog2.f32 %v1143_v54  ;;  %v203_v62 = vadd.f32 1.0, %v202_v59  ;;  %vm206_vm2 = vcmp.lt.f32.partialorder %v205_v63, 0.0004427343 }
  0xf7   :  { %v904_v56 = vpop.eup %903  ;;  %909 = vlog2.f32 %v1145_v55  ;;  %v194_v1 = vadd.f32 1.0, %v193_v61  ;;  %vm197_vm4 = vcmp.lt.f32.partialorder %v196_v3, 0.0004427343 }
  0xf8   :  { %v906_v57 = vpop.eup %905  ;;  %v1149_v58 = vadd.f32 1.0, %v904_v56  ;;  %v220_v0 = vmul.f32 -0.5, %v904_v56  ;;  %v204_v7 = vmul.f32 %v900_v52, %v203_v62  ;;  %v223_v13 = vand.u32 2147483647, %v904_v56 }
  0xf9   :  { %v1151_v60 = vadd.f32 1.0, %v906_v57  ;;  %v211_v2 = vmul.f32 -0.5, %v906_v57  ;;  %v195_v11 = vmul.f32 %v902_v53, %v194_v1  ;;  %v214_v16 = vand.u32 2147483647, %v906_v57 }
  0xfa   :  { %911 = vlog2.f32 %v1149_v58  ;;  %v221_v8 = vadd.f32 1.0, %v220_v0  ;;  %vm224_vm6 = vcmp.lt.f32.partialorder %v223_v13, 0.0004427343 }
  0xfb   :  { %913 = vlog2.f32 %v1151_v60  ;;  %v212_v12 = vadd.f32 1.0, %v211_v2  ;;  %vm215_vm8 = vcmp.lt.f32.partialorder %v214_v16, 0.0004427343 }
  0xfc   :  { %v222_v27 = vmul.f32 %v904_v56, %v221_v8 }
  0xfd   :  { %v213_v34 = vmul.f32 %v906_v57, %v212_v12 }
 0x100   :  { %v908_v4 = vpop.eup %907 }
 0x101   :  { %v910_v5 = vpop.eup %909  ;;  %v201_v6 = vmul.f32 0.6931472, %v908_v4 }
 0x102   :  { %v192_v10 = vmul.f32 0.6931472, %v910_v5 }
 0x103   :  { %v207_v15 = vsel %vm206_vm2, %v204_v7, %v201_v6 }
 0x104   :  { %v912_v18 = vpop.eup %911  ;;  %v198_v19 = vsel %vm197_vm4, %v195_v11, %v192_v10  ;;  %v227_v20 = vsel %vm187_vm3, %v161_v36, %v207_v15  ;;  %v435_v15 = vpop.permute.xlu1 %434  ;;  %vm476_vm4 = vcmask 122880  }
 0x105   :  { %v914_v21 = vpop.eup %913  ;;  %v226_v22 = vsel %vm186_vm5, %v156_v38, %v198_v19  ;;  %v219_v26 = vmul.f32 0.6931472, %v912_v18 }
 0x106   :  { %v867_v28 = vpack.c.bf16 %v227_v20, %v226_v22  ;;  %v210_v33 = vmul.f32 0.6931472, %v914_v21 }
 0x107   :  { %v225_v35 = vsel %vm224_vm6, %v222_v27, %v219_v26 }
 0x108   :  { %868 = vmatprep.subr.bf16.mxu1 %v867_v28  ;;  %v216_v37 = vsel %vm215_vm8, %v213_v34, %v210_v33  ;;  %v229_v39 = vsel %vm189_vm7, %v1137_v44, %v225_v35 }
 0x109   :  { %870 = vmatpush3.bf16.msra.mxu1 %v867_v28  ;;  %v228_v36 = vsel %vm188_vm9, %v1139_v47, %v216_v37 }
 0x10a   :  { %v871_v38 = vpack.c.bf16 %v229_v39, %v228_v36 }
 0x10c   :  { %872 = vmatprep.subr.bf16.mxu1 %v871_v38 }
 0x10d   :  { %874 = vmatpush3.bf16.msra.mxu1 %v871_v38  ;;  %v499_v38 = vpop.trf.xlu0 }
 0x10e   :  { %884 = vmatprep.subr.bf16.mxu1 %v1059_v9 }
 0x110   :  { %831 = vmatmul.mubr.msk.f32.vlgmr.msra.gmra.mrb[0].mxu1 %vm70_vm0, %v1113_v23 }
 0x111   :  { %833 = vmatprep.mubr.msk.f32.mxu1 %vm70_vm0, %v1119_v24  ;;  %886 = vmatpush3.bf16.msra.mxu1 %v1059_v9 }
 0x114   :  { %834 = vmatmul.mubr.msk.f32.gmra.mrb[2].mxu1 %vm70_vm0, %v1125_v25 }
 0x1e3   :  { %v832_v41 = vpop.f32.mrb[0].mxu1 }
 0x1e4   :  { %v1167_v42 = vadd.f32 %v832_v41, %v250_v40  ;;  %v340_v43 = vpop.f32.mrb[1].mxu1 }
 0x1e5   :  { %v1170_v44 = vadd.f32 %v340_v43, %v1128_v29 }
 0x1e6   :  { %v360_v45 = vmin.f32 %v1167_v42, 20.0  ;;  %vm372_vm10 = vcmp.gt.f32.partialorder %v1167_v42, 20.0 }
 0x1e7   :  { %v359_v23 = vmin.f32 %v1170_v44, 20.0  ;;  %v835_v47 = vpop.f32.mrb[2].mxu1  ;;  %vm371_vm13 = vcmp.gt.f32.partialorder %v1170_v44, 20.0 }
 0x1e8   :  { %v365_v24 = vmul.f32 1.442695, %v360_v45  ;;  %v1174_v48 = vadd.f32 %v835_v47, %v260_v46  ;;  %v350_v9 = vpop.f32.mrb[3].mxu1 }
 0x1e9   :  { %v363_v49 = vmul.f32 1.442695, %v359_v23  ;;  %v1177_v25 = vadd.f32 %v350_v9, %v1130_v30 }
 0x1ea   :  { %915 = vpow2.f32 %v365_v24  ;;  %v362_v50 = vmin.f32 %v1174_v48, 20.0  ;;  %vm374_vm15 = vcmp.gt.f32.partialorder %v1174_v48, 20.0  ;;  %v445_v24 = vpop.permute.xlu1 %444 }
 0x1eb   :  { %917 = vpow2.f32 %v363_v49  ;;  %v361_v29 = vmin.f32 %v1177_v25, 20.0  ;;  %vm373_vm1 = vcmp.gt.f32.partialorder %v1177_v25, 20.0 }
 0x1ec   :  { %v369_v51 = vmul.f32 1.442695, %v362_v50 }
 0x1ed   :  { %v367_v52 = vmul.f32 1.442695, %v361_v29 }
 0x1ee   :  { %919 = vpow2.f32 %v369_v51 }
 0x1ef   :  { %921 = vpow2.f32 %v367_v52 }
 0x1f4   :  { %v916_v53 = vpop.eup %915 }
 0x1f5   :  { %v918_v56 = vpop.eup %917  ;;  %v384_v57 = vadd.f32 1.0, %v916_v53  ;;  %v387_v63 = vmul.f32 -0.5, %v916_v53  ;;  %v390_v3 = vand.u32 2147483647, %v916_v53 }
 0x1f6   :  { %v375_v59 = vadd.f32 1.0, %v918_v56  ;;  %v378_v1 = vmul.f32 -0.5, %v918_v56  ;;  %v381_v7 = vand.u32 2147483647, %v918_v56 }
 0x1f7   :  { %923 = vlog2.f32 %v384_v57  ;;  %v388_v2 = vadd.f32 1.0, %v387_v63  ;;  %vm391_vm12 = vcmp.lt.f32.partialorder %v390_v3, 0.0004427343 }
 0x1f8   :  { %v920_v61 = vpop.eup %919  ;;  %925 = vlog2.f32 %v375_v59  ;;  %v379_v5 = vadd.f32 1.0, %v378_v1  ;;  %vm382_vm14 = vcmp.lt.f32.partialorder %v381_v7, 0.0004427343 }
 0x1f9   :  { %v922_v62 = vpop.eup %921  ;;  %v402_v30 = vadd.f32 1.0, %v920_v61  ;;  %v405_v4 = vmul.f32 -0.5, %v920_v61  ;;  %v389_v12 = vmul.f32 %v916_v53, %v388_v2  ;;  %v408_v19 = vand.u32 2147483647, %v920_v61 }
 0x1fa   :  { %v393_v0 = vadd.f32 1.0, %v922_v62  ;;  %v396_v6 = vmul.f32 -0.5, %v922_v62  ;;  %v380_v18 = vmul.f32 %v918_v56, %v379_v5  ;;  %v399_v22 = vand.u32 2147483647, %v922_v62 }
 0x1fb   :  { %927 = vlog2.f32 %v402_v30  ;;  %v406_v13 = vadd.f32 1.0, %v405_v4  ;;  %vm409_vm2 = vcmp.lt.f32.partialorder %v408_v19, 0.0004427343 }
 0x1fc   :  { %929 = vlog2.f32 %v393_v0  ;;  %v397_v20 = vadd.f32 1.0, %v396_v6  ;;  %vm400_vm3 = vcmp.lt.f32.partialorder %v399_v22, 0.0004427343 }
 0x1fd   :  { %931 = vrcp.f32 %v375_v59  ;;  %v407_v39 = vmul.f32 %v920_v61, %v406_v13 }
 0x1fe   :  { %933 = vrcp.f32 %v384_v57  ;;  %v398_v43 = vmul.f32 %v922_v62, %v397_v20 }
 0x1ff   :  { %935 = vrcp.f32 %v393_v0 }
 0x200   :  { %937 = vrcp.f32 %v402_v30  ;;  %v500_v30 = vpop.trf.xlu0 }
 0x201   :  { %v924_v8 = vpop.eup %923  ;;  %939 = vrcp.f32 %v1143_v54 }
 0x202   :  { %v926_v10 = vpop.eup %925  ;;  %v386_v11 = vmul.f32 0.6931472, %v924_v8  ;;  %941 = vrcp.f32 %v1145_v55  ;;  %v887_v55 = vpack.c.bf16 %v1091_v17, %v1077_v14 }
 0x203   :  { %v377_v16 = vmul.f32 0.6931472, %v926_v10  ;;  %943 = vrcp.f32 %v1149_v58 }
 0x204   :  { %v392_v21 = vsel %vm391_vm12, %v389_v12, %v386_v11  ;;  %v501_v6 = vpop.trf.xlu0  ;;  %945 = vrcp.f32 %v1151_v60  ;;  %888 = vmatprep.subr.bf16.mxu1 %v887_v55 }
 0x205   :  { %v928_v26 = vpop.eup %927  ;;  %v412_v27 = vsel %vm372_vm10, %v1167_v42, %v392_v21  ;;  %v383_v28 = vsel %vm382_vm14, %v380_v18, %v377_v16  ;;  %890 = vmatpush3.bf16.msra.mxu1 %v887_v55 }
 0x206   :  { %v930_v33 = vpop.eup %929  ;;  %v448_v34 = vmul.f32 %v435_v15, %v412_v27  ;;  %v411_v35 = vsel %vm371_vm13, %v1170_v44, %v383_v28  ;;  %v404_v37 = vmul.f32 0.6931472, %v928_v26 }
 0x207   :  { %v932_v36 = vpop.eup %931  ;;  %v447_v40 = vmul.f32 %v1132_v31, %v411_v35  ;;  %v395_v41 = vmul.f32 0.6931472, %v930_v33 }
 0x208   :  { %v934_v45 = vpop.eup %933  ;;  %v453_v42 = vsel %vm451_vm11, %v448_v34, 0.0  ;;  %v410_v46 = vsel %vm409_vm2, %v407_v39, %v404_v37  ;;  %v423_v23 = vsub.f32 1.0, %v932_v36  ;;  %v469_v12 = vpop.permute.xlu0 %468 }
 0x209   :  { %v936_v47 = vpop.eup %935  ;;  %v452_v9 = vsel %vm451_vm11, %v447_v40, 0.0  ;;  %v414_v44 = vsel %vm374_vm15, %v1174_v48, %v410_v46  ;;  %v401_v49 = vsel %vm400_vm3, %v398_v43, %v395_v41  ;;  %v424_v50 = vsub.f32 1.0, %v934_v45 }
 0x20a   :  { %v938_v29 = vpop.eup %937  ;;  %v454_v51 = vadd.f32 %v453_v42, %v452_v9  ;;  %v450_v52 = vmul.f32 %v445_v24, %v414_v44  ;;  %v413_v53 = vsel %vm373_vm1, %v1177_v25, %v401_v49  ;;  %v478_v56 = vmul.f32 %v1132_v31, %v423_v23 }
 0x20b   :  { %v449_v57 = vmul.f32 %v1134_v32, %v413_v53  ;;  %v479_v59 = vmul.f32 %v435_v15, %v424_v50  ;;  %v425_v61 = vsub.f32 1.0, %v936_v47  ;;  %v426_v62 = vsub.f32 1.0, %v938_v29  ;;  %v940_v19 = vpop.eup %939 }
 0x20c   :  { %v457_v3 = vsel %vm451_vm11, %v450_v52, 0.0  ;;  %v471_v25 = vlaneseq  ;;  %v942_v20 = vpop.eup %941  ;;  %v239_v21 = vsub.f32 1.0, %v940_v19 }
 0x20d   :  { %v455_v63 = vsel %vm451_vm11, %v449_v57, 0.0  ;;  %v875_v48 = vpack.c.bf16 %v479_v59, %v478_v56  ;;  %v480_v0 = vmul.f32 %v1134_v32, %v425_v61  ;;  %v481_v1 = vmul.f32 %v445_v24, %v426_v62  ;;  %v944_v22 = vpop.eup %943 }
 0x20e   :  { %v456_v2 = vadd.f32 %v455_v63, %v454_v51  ;;  %v472_v7 = vshrl.u32 %v471_v25, 7  ;;  %v238_v27 = vsub.f32 1.0, %v942_v20  ;;  %v946_v28 = vpop.eup %945  ;;  %v241_v37 = vsub.f32 1.0, %v944_v22 }
 0x20f   :  { %876 = vmatprep.subr.bf16.mxu0 %v875_v48  ;;  %v879_v4 = vpack.c.bf16 %v481_v1, %v480_v0  ;;  %v240_v54 = vsub.f32 1.0, %v946_v28 }
 0x210   :  { %878 = vmatpush3.bf16.msra.mxu0 %v875_v48  ;;  %v458_v31 = vadd.f32 %v457_v3, %v456_v2  ;;  %v473_v11 = vsub.s32 0, %v472_v7 }
 0x211   :  { %880 = vmatprep.subr.bf16.mxu0 %v879_v4 }
 0x212   :  { %v459_v5 = vrot.slane %v458_v31, 4  ;;  %v474_v15 = vrot.slane %v469_v12, %v473_v11 }
 0x214   :  { %882 = vmatpush3.bf16.msra.mxu0 %v879_v4  ;;  %v460_v8 = vadd.f32 %v459_v5, %v458_v31 }
 0x216   :  { %v461_v10 = vrot.slane %v460_v8, 2 }
 0x217   :  { %845 = vmatmul.mubr.msk.f32.vlgmr.msra.gmra.mrb[4].mxu0 %vm70_vm0, %v499_v38 }
 0x218   :  { %847 = vmatprep.mubr.msk.f32.mxu0 %vm70_vm0, %v500_v30  ;;  %v462_v32 = vadd.f32 %v461_v10, %v460_v8 }
 0x21a   :  { %v463_v13 = vrot.slane %v462_v32, 1 }
 0x21b   :  { %848 = vmatmul.mubr.msk.f32.gmra.mrb[6].mxu0 %vm70_vm0, %v501_v6 }
 0x21c   :  { %v464_v16 = vadd.f32 %v463_v13, %v462_v32 }
 0x21e   :  { %v475_v18 = vadd.f32 %v474_v15, %v464_v16 }
 0x220   :  { %477 = vst.msk [vmem:[#allocation3] sm:$0x1] %vm476_vm4, %v475_v18 }
 0x2ea   :  { %v846_v26 = vpop.f32.mrb[4].mxu0 }
 0x2eb   :  { %v612_v33 = vmul.f32 %v846_v26, %v239_v21  ;;  %v592_v34 = vpop.f32.mrb[5].mxu0 }
 0x2ec   :  { %v611_v35 = vmul.f32 %v592_v34, %v238_v27 }
 0x2ee   :  { %615 = vxpose.xlu1.b32.start [1/4] (short) (narrow) %v611_v35, 16  ;;  %v849_v39 = vpop.f32.mrb[6].mxu0 }
 0x2ef   :  { %v614_v58 = vmul.f32 %v849_v39, %v241_v37  ;;  %v602_v36 = vpop.f32.mrb[7].mxu0 }
 0x2f0   :  { %v613_v60 = vmul.f32 %v602_v36, %v240_v54 }
 0x2f2   :  { %616 = vxpose.xlu1.b32.cont [2/4] (short) (narrow) %v612_v33, 16 }
 0x2f6   :  { %617 = vxpose.xlu1.b32.cont [3/4] (short) (narrow) %v613_v60, 16 }
 0x2fa   :  { %618 = vxpose.xlu1.b32.end [4/4] (short) (narrow) %v614_v58, 16 }
 0x36e   :  { %v631_v38 = vpop.trf.xlu1 }
 0x36f   :  { %858 = vmatprep.mubr.msk.f32.mxu1 %vm70_vm0, %v631_v38 }
 0x372   :  { %v632_v40 = vpop.trf.xlu1 }
 0x373   :  { %859 = vmatmul.mubr.msk.f32.vlgmr.msra.gmra.mrb[4].mxu1 %vm70_vm0, %v632_v40 }
 0x374   :  { %958 = shalt.err (!%p955_p4)
}
 0x375   :  { %s959_s18 = scalar_lea.hbm %s1245_s5, 16 }
 0x376   :  { %p960_p5 = scmp.ne.s32.totalorder %s1245_s5, %s959_s18  ;;  %p963_p6 = scmp.lt.u32.totalorder %s959_s18, %s1245_s5 }
 0x378   :  { %p965_p7 = pnand %p963_p6, %p960_p5 }
 0x37a   :  { %968 = shalt.err (!%p965_p7)
}
 0x37b   :  { %739 = dma.vmem_to_hbm [thread:$0]  %s737_s3, 16, %s1245_s5, [#allocation4]  }
 0x37c   :  { %s997_s25 = smov [#allocation5]  }
 0x37d   :  { %s745_s26 = sshll.u32 %s997_s25, 4  ;;  %s746_s26 = int_to_ptr.vmem [resolvable:$true] %s745_s26 }
 0x37e   :  { %s969_s27 = scalar_lea.vmem %s746_s26, 256  ;;  %p974_p9 = scmp.lt.s32.totalorder %s746_s26, %s746_s26 }
 0x37f   :  { %p970_p8 = scmp.ne.s32.totalorder %s746_s26, %s969_s27  ;;  %p975_p10 = scmp.lt.s32.totalorder %s969_s27, %s969_s27 }
 0x381   :  { %p976_p11 = por %p975_p10, %p974_p9 }
 0x383   :  { %p977_p12 = pnand %p976_p11, %p970_p8 }
 0x446   :  { %v860_v14 = vpop.f32.mrb[4].mxu1 }
 0x447   :  { %729 = vst.msk [vmem:[#allocation5 + $0x8] sm:$0xff] %vm70_vm0, %v860_v14  ;;  %v719_v17 = vpop.f32.mrb[5].mxu1 }
 0x448   :  { %728 = vst.msk [vmem:[#allocation5] sm:$0xff] %vm70_vm0, %v719_v17 }
 0x449   :  { %980 = shalt.err (!%p977_p12)
}
 0x44a   :  { %s981_s5 = scalar_lea.hbm %s1246_s6, 256 }
 0x44b   :  { %p982_p13 = scmp.ne.s32.totalorder %s1246_s6, %s981_s5  ;;  %p985_p0 = scmp.lt.u32.totalorder %s981_s5, %s1246_s6 }
 0x44d   :  { %p987_p1 = pnand %p985_p0, %p982_p13 }
 0x44f   :  { %990 = shalt.err (!%p987_p1)
}
 0x450   :  { %s998_s0 = smov 128   ;;  %s999_s9 = smov 8  }
 0x451   :  { %751 = dma.vmem_to_hbm [thread:$0]  %s746_s26, 256, %s1246_s6, [#allocation6], %s998_s0, %s998_s0, %s999_s9  }
 0x452   :  { %991 = dma.done.wait [#allocation4], 16  }
 0x453   :  { %992 = vsyncadd [#allocation4], 4294967280 }
 0x454   :  { %993 = dma.done.wait [#allocation6], 256  }
 0x455   :  { %994 = vsyncadd [#allocation6], 4294967040 }
 0x456   :  { %758 = vsyncpa [#allocation4], 1 }
 0x457   :  { %759 = vsyncpa [#allocation6], 1 }

</bundles_post_ra>
